<compile_context>
chip_gen: v5e
topology: v5e:2x2
jax: 0.10.0
libtpu: 0.0.40
codegen_flags: <defaults>
</compile_context>

<pallas_src>
import functools

import jax
import jax.numpy as jnp
import numpy as np
from jax import lax
from jax.experimental import pallas as pl
from jax.experimental.pallas import tpu as pltpu


def _ssym_kernel(x_ref, wq_ref, bq_ref, wk_ref, bk_ref, s_ref, *, scale):
    """One-shot: S_sym = scale * (q k^T + k q^T), stored in bf16."""
    x = x_ref[...]
    q = jnp.dot(x, wq_ref[...], preferred_element_type=jnp.float32) + bq_ref[...]
    k = jnp.dot(x, wk_ref[...], preferred_element_type=jnp.float32) + bk_ref[...]
    contract_last = (((1,), (1,)), ((), ()))          # contract the A axis
    s = lax.dot_general(q, k, contract_last, preferred_element_type=jnp.float32)
    s = s + lax.dot_general(k, q, contract_last, preferred_element_type=jnp.float32)
    s_ref[...] = (scale * s).astype(s_ref.dtype)


def _edge_kernel(s_sym_ref, niota_ref, edge_ref, a1_ref, a0_ref):
    """Per edge tile: gather pre[e] = S_sym[src(e), dst(e)], a1 = exp(pre),
    and the scatter-add of the duplicated edge scores onto both endpoints."""
    niota = niota_ref[...]                                    # [Np, TE] int32
    src = edge_ref[0:1, :]                                    # [1, TE]
    dst = edge_ref[1:2, :]                                    # [1, TE]
    cmp_src = src == niota                                    # [Np, TE] bool
    cmp_dst = dst == niota                                    # [Np, TE] bool

    # Column-gather on the MXU (bf16 operands) + masked sublane reduce for the
    # row pick:  column e of (S_sym @ oh_dst) is S_sym[:, dst(e)].
    oh_dst = cmp_dst.astype(jnp.bfloat16)                     # [Np, TE]
    t = jnp.dot(s_sym_ref[...], oh_dst,
                preferred_element_type=jnp.float32)           # [Np, TE]
    pre = jnp.sum(jnp.where(cmp_src, t, 0.0), axis=0, keepdims=True)  # [1, TE]
    # NOTE: no max-subtraction, matching the reference module; can overflow
    # for trained weights producing large scores.
    a1 = jnp.exp(pre)
    a1_ref[...] = a1                                          # lane-dense store

    # Scatter-add onto nodes as an MXU contraction over the edge tile.
    # counts kept f32 (M=1 matmul is negligible; keeps full a1 precision).
    counts = cmp_src.astype(jnp.float32) + cmp_dst.astype(jnp.float32)
    a0_ref[...] = lax.dot_general(
        a1, counts, (((1,), (1,)), ((), ())),
        preferred_element_type=jnp.float32)                   # [1, Np]


def sparse_node_edge_attention(x, edge_index, d0_index, wq, bq, wk, bk, heads,
                               *, edge_tile=512):
    """Returns (diagA0, diagA1).  edge_tile: sweep {256, 512, 1024} for large E.

    d0_index is accepted for API fidelity with the torch module but not read:
    the module's duplicated scatter columns d0_index[1] are exactly the two
    endpoints of each edge, so the scatter uses edge_index directly.
    TODO(synk): support arbitrary d0 columns via a packed [8, E_pad] int32
    index stream rebuilt into the counts one-hots.
    """
    del d0_index
    assert edge_tile % 128 == 0
    n_nodes, hidden_dim = x.shape
    n_edges = edge_index.shape[1]
    scale = 0.5 / float(heads)

    # Node axis padded to a multiple of 128: lane-dense a0 writeback and a
    # 128-wide contraction dim for the gather matmul.  Padded node ids are
    # never matched by a real edge, so they contribute nothing.
    n_pad = ((n_nodes + 127) // 128) * 128

    # ---- one-shot projections + symmetrized, pre-scaled score matrix ------
    x_pad = jnp.pad(x.astype(jnp.float32), ((0, n_pad - n_nodes), (0, 0)))
    s_sym = pl.pallas_call(
        functools.partial(_ssym_kernel, scale=scale),
        out_shape=jax.ShapeDtypeStruct((n_pad, n_pad), jnp.bfloat16),
    )(x_pad,
      wq.astype(jnp.float32), bq.reshape(1, -1).astype(jnp.float32),
      wk.astype(jnp.float32), bk.reshape(1, -1).astype(jnp.float32))

    # ---- edge-tiled scoring + scatter --------------------------------------
    n_tiles = pl.cdiv(n_edges, edge_tile)
    e_pad = n_tiles * edge_tile
    pad = e_pad - n_edges
    # Edges on the lane axis; padded lanes use -1 (never matches a node id,
    # so padded a1 lanes hold exp(0)=1 and are sliced off below, and padded
    # counts columns are all-zero).
    edge_t = jnp.pad(edge_index.astype(jnp.int32), ((0, 0), (0, pad)),
                     constant_values=-1)                      # [2, Epad]
    # Constant-index node-id plane (replaces a per-step broadcasted_iota).
    niota = jnp.broadcast_to(
        jnp.arange(n_pad, dtype=jnp.int32)[:, None], (n_pad, edge_tile))

    # VMEM budget: constant blocks + double-buffered edge/a1/a0 blocks +
    # [Np, TE] in-kernel temporaries (cmp x2, oh_dst, t, counts) headroom.
    vmem_need = (2 * n_pad * n_pad * 2            # S_sym (bf16)
                 + 2 * n_pad * edge_tile * 4      # node-id plane
                 + 2 * (2 * edge_tile * 4)        # edge tiles
                 + 2 * (edge_tile * 4)            # a1 tiles
                 + 2 * (n_pad * 4)                # a0 partial tiles
                 + 6 * n_pad * edge_tile * 4)     # temporaries headroom
    vmem_limit = int(min(64 * 1024 * 1024,
                         max(2 * vmem_need, 16 * 1024 * 1024)))

    grid_spec = pltpu.PrefetchScalarGridSpec(
        num_scalar_prefetch=0,
        grid=(n_tiles,),
        in_specs=[
            pl.BlockSpec((n_pad, n_pad), lambda e: (0, 0)),       # S_sym
            pl.BlockSpec((n_pad, edge_tile), lambda e: (0, 0)),   # node ids
            pl.BlockSpec((2, edge_tile), lambda e: (0, e)),       # edge_index
        ],
        out_specs=(
            pl.BlockSpec((1, edge_tile), lambda e: (0, e)),       # diagA1
            pl.BlockSpec((None, 1, n_pad), lambda e: (e, 0, 0)),  # a0 partials
        ),
    )

    diag_a1, a0_parts = pl.pallas_call(
        _edge_kernel,
        out_shape=(jax.ShapeDtypeStruct((1, e_pad), jnp.float32),
                   jax.ShapeDtypeStruct((n_tiles, 1, n_pad), jnp.float32)),
        grid_spec=grid_spec,
        compiler_params=pltpu.CompilerParams(
            # Edge tiles are fully independent -> megacore sharding on v7x.
            dimension_semantics=("parallel",),
            vmem_limit_bytes=vmem_limit),
    )(s_sym, niota, edge_t)

    diag_a0 = jnp.sum(a0_parts, axis=0)[0, :n_nodes]
    return diag_a0, diag_a1[0, :n_edges]


def reference(x, edge_index, d0_index, wq, bq, wk, bk, heads, n_nodes):
    q = x @ wq + bq
    k = x @ wk + bk
    q_i = q[edge_index[0]]
    k_j = k[edge_index[1]]
    q_j = q[edge_index[1]]
    k_i = k[edge_index[0]]
    pre = (0.5 / heads) * jnp.sum(q_i * k_j + q_j * k_i, axis=-1)
    a1 = jnp.exp(pre)
    score2 = jnp.repeat(a1, 2)
    a0 = jax.ops.segment_sum(score2, d0_index[1], num_segments=n_nodes)
    return a0, a1


if __name__ == "__main__":
    # opt = {hidden_dim: 32, heads: 2, attention_ratio: 8,
    #        attention_type: 'scaled_dot', no_symmetrize: False,
    #        use_squareplus: False}
    n_nodes, hidden_dim = 64, 32
    heads, attention_ratio = 2, 8
    attention_dim = attention_ratio * heads      # 16, d_k = 8
    n_edges = 300                                # > edge_tile -> 2-tile grid

    key = jax.random.PRNGKey(0)
    kx, ke, kq, kk = jax.random.split(key, 4)

    x = jax.random.normal(kx, (n_nodes, hidden_dim), dtype=jnp.float32)
    edge_index = jax.random.randint(ke, (2, n_edges), 0, n_nodes, dtype=jnp.int32)

    # d0 incidence columns: each edge's score is scattered to its two endpoints
    # (duplicate-then-scatter pattern of the torch module).
    d0_cols = jnp.stack([edge_index[0], edge_index[1]], axis=1).reshape(-1)  # [2E]
    d0_index = jnp.stack([jnp.arange(2 * n_edges, dtype=jnp.int32), d0_cols],
                         axis=0)

    # Small random weights (pre-transposed: [hidden_dim, attention_dim]) so
    # edge scores are non-trivial; the module's constant init (1e-5 / 0.01)
    # would make the correctness check nearly degenerate.
    wq = 0.05 * jax.random.normal(kq, (hidden_dim, attention_dim), jnp.float32)
    bq = jnp.full((attention_dim,), 0.01, dtype=jnp.float32)
    wk = 0.05 * jax.random.normal(kk, (hidden_dim, attention_dim), jnp.float32)
    bk = jnp.full((attention_dim,), 0.01, dtype=jnp.float32)

    # edge_tile=256 here so the small example exercises the multi-tile /
    # partial-accumulation path; for large graphs sweep {256, 512, 1024}.
    diag_a0, diag_a1 = sparse_node_edge_attention(
        x, edge_index, d0_index, wq, bq, wk, bk, heads, edge_tile=256)
    jax.block_until_ready((diag_a0, diag_a1))

    ref_a0, ref_a1 = reference(x, edge_index, d0_index, wq, bq, wk, bk,
                               heads, n_nodes)
    # Tolerance covers the bf16 S_sym storage and default-precision MXU paths
    # on both sides; structural errors would be orders of magnitude larger.
    assert np.allclose(np.asarray(diag_a1), np.asarray(ref_a1),
                       rtol=1e-2, atol=1e-2)
    assert np.allclose(np.asarray(diag_a0), np.asarray(ref_a0),
                       rtol=1e-2, atol=1e-2)

    print("KERNEL_OK")
</pallas_src>

<mosaic_0001>
module attributes {stable_mosaic.version = 11 : i64} {
  func.func @_ssym_kernel(%arg0: memref<128x32xf32, #tpu.memory_space<vmem>>, %arg1: memref<32x16xf32, #tpu.memory_space<vmem>>, %arg2: memref<1x16xf32, #tpu.memory_space<vmem>>, %arg3: memref<32x16xf32, #tpu.memory_space<vmem>>, %arg4: memref<1x16xf32, #tpu.memory_space<vmem>>, %arg5: memref<128x128xbf16, #tpu.memory_space<vmem>>) attributes {dimension_semantics = [], scalar_prefetch = 0 : i64, scratch_operands = 0 : i64, tpu.core_type = #tpu.core_type<tc>} {
    %c0 = arith.constant 0 : index
    %c0_0 = arith.constant 0 : index
    %0 = vector.load %arg0[%c0, %c0_0] : memref<128x32xf32, #tpu.memory_space<vmem>>, vector<128x32xf32>
    %c0_1 = arith.constant 0 : index
    %c0_2 = arith.constant 0 : index
    %1 = vector.load %arg1[%c0_1, %c0_2] : memref<32x16xf32, #tpu.memory_space<vmem>>, vector<32x16xf32>
    %cst = arith.constant dense<0.000000e+00> : vector<128x16xf32>
    %2 = tpu.matmul %0, %1, %cst {dimension_numbers = #tpu.dot_dimension_numbers<[1], [0], [0], [1], [0, 0, 1, 1], [], []>} : vector<128x32xf32>, vector<32x16xf32>, vector<128x16xf32> -> vector<128x16xf32>
    %c0_3 = arith.constant 0 : index
    %c0_4 = arith.constant 0 : index
    %3 = vector.load %arg2[%c0_3, %c0_4] : memref<1x16xf32, #tpu.memory_space<vmem>>, vector<1x16xf32>
    %4 = vector.broadcast %3 : vector<1x16xf32> to vector<128x16xf32>
    %5 = arith.addf %2, %4 : vector<128x16xf32>
    %c0_5 = arith.constant 0 : index
    %c0_6 = arith.constant 0 : index
    %6 = vector.load %arg3[%c0_5, %c0_6] : memref<32x16xf32, #tpu.memory_space<vmem>>, vector<32x16xf32>
    %cst_7 = arith.constant dense<0.000000e+00> : vector<128x16xf32>
    %7 = tpu.matmul %0, %6, %cst_7 {dimension_numbers = #tpu.dot_dimension_numbers<[1], [0], [0], [1], [0, 0, 1, 1], [], []>} : vector<128x32xf32>, vector<32x16xf32>, vector<128x16xf32> -> vector<128x16xf32>
    %c0_8 = arith.constant 0 : index
    %c0_9 = arith.constant 0 : index
    %8 = vector.load %arg4[%c0_8, %c0_9] : memref<1x16xf32, #tpu.memory_space<vmem>>, vector<1x16xf32>
    %9 = vector.broadcast %8 : vector<1x16xf32> to vector<128x16xf32>
    %10 = arith.addf %7, %9 : vector<128x16xf32>
    %cst_10 = arith.constant dense<0.000000e+00> : vector<128x128xf32>
    %11 = tpu.matmul %5, %10, %cst_10 {dimension_numbers = #tpu.dot_dimension_numbers<[1], [1], [0], [0], [0, 0, 1, 0], [], []>} : vector<128x16xf32>, vector<128x16xf32>, vector<128x128xf32> -> vector<128x128xf32>
    %cst_11 = arith.constant dense<0.000000e+00> : vector<128x128xf32>
    %12 = tpu.matmul %10, %5, %cst_11 {dimension_numbers = #tpu.dot_dimension_numbers<[1], [1], [0], [0], [0, 0, 1, 0], [], []>} : vector<128x16xf32>, vector<128x16xf32>, vector<128x128xf32> -> vector<128x128xf32>
    %13 = arith.addf %11, %12 : vector<128x128xf32>
    %cst_12 = arith.constant 2.500000e-01 : f32
    %14 = vector.broadcast %cst_12 : f32 to vector<128x128xf32>
    %15 = arith.mulf %14, %13 : vector<128x128xf32>
    %16 = arith.truncf %15 : vector<128x128xf32> to vector<128x128xbf16>
    %c0_13 = arith.constant 0 : index
    %c0_14 = arith.constant 0 : index
    %17 = vector.load %arg5[%c0_13, %c0_14] : memref<128x128xbf16, #tpu.memory_space<vmem>>, vector<128x128xbf16>
    tpu.vector_store %arg5[%c0_13, %c0_14], %16 {strides = array<i32>} : memref<128x128xbf16, #tpu.memory_space<vmem>>, vector<128x128xbf16>,
    return
  }
}

</mosaic_0001>

<bundles_post_ra>
// kernel: tpu_custom_call.1
= control target key start
LH: loop header
LB: loop body
LE: loop exit
PB: predicated region body
PF: predicated region fallthrough
CT: control target
= control target key end

     0   :  { %vm45_vm0 = vcmask 261120   ;;  %s1142_s0 = inlined_call_operand.vmem [shape: f32[128,32], index: 0, kind: input, shape index: {}]   ;;  %s1143_s1 = inlined_call_operand.vmem [shape: f32[32,16], index: 1, kind: input, shape index: {}]   ;;  %s1144_s2 = inlined_call_operand.vmem [shape: f32[1,16], index: 2, kind: input, shape index: {}]   ;;  %s1145_s3 = inlined_call_operand.vmem [shape: f32[32,16], index: 3, kind: input, shape index: {}]   ;;  %s1146_s4 = inlined_call_operand.vmem [shape: f32[1,16], index: 4, kind: input, shape index: {}]   ;;  %s1147_s5 = inlined_call_operand.hbm [shape: bf16[128,128], index: 5, kind: output, shape index: {}]  }
   0x1   :  { %v40_v0 = vld [vmem:[%s1143_s1 + $0x18] sm:$0xff]  ;;  %v39_v2 = vld [vmem:[%s1143_s1 + $0x10] sm:$0xff]  ;;  %v38_v4 = vld [vmem:[%s1143_s1 + $0x8] sm:$0xff] }
   0x2   :  { %v162_v1 = vld [vmem:[%s1145_s3 + $0x18] sm:$0xff]  ;;  %106 = vmatpush.msra.mxu0 %v40_v0  ;;  %v161_v3 = vld [vmem:[%s1145_s3 + $0x10] sm:$0xff]  ;;  %v160_v5 = vld [vmem:[%s1145_s3 + $0x8] sm:$0xff] }
   0x3   :  { %179 = vmatpush.msra.mxu1 %v162_v1  ;;  %v37_v6 = vld [vmem:[%s1143_s1] sm:$0xff] }
   0x4   :  { %107 = vmatpush.msra.mxu0 %v39_v2  ;;  %v159_v7 = vld [vmem:[%s1145_s3] sm:$0xff] }
   0x5   :  { %180 = vmatpush.msra.mxu1 %v161_v3  ;;  %v21_v8 = vld [vmem:[%s1142_s0] sm:$0xff] }
   0x6   :  { %108 = vmatpush.msra.mxu0 %v38_v4 }
   0x7   :  { %181 = vmatpush.msra.mxu1 %v160_v5 }
   0x8   :  { %10 = vsyncpa [#allocation3], 0  ;;  %109 = vmatpush.msra.mxu0 %v37_v6  ;;  %v22_v9 = vld [vmem:[%s1142_s0 + $0x8] sm:$0xff]  ;;  %v23_v10 = vld [vmem:[%s1142_s0 + $0x10] sm:$0xff]  ;;  %vm232_vm1 = vcmask 130048   ;;  %s513_s17 = sshll.u32 %s1147_s5, 4  ;;  %s514_s17 = int_to_ptr.hbm [resolvable:$true] %s513_s17 }
   0x9   :  { %182 = vmatpush.msra.mxu1 %v159_v7  ;;  %525 = vmatmul.msk.f32.vlgmr.msra.gmra.mxu0 %vm45_vm0, %v21_v8  ;;  %v24_v11 = vld [vmem:[%s1142_s0 + $0x18] sm:$0xff]  ;;  %v25_v12 = vld [vmem:[%s1142_s0 + $0x20] sm:$0xff]  ;;  %v26_v13 = vld [vmem:[%s1142_s0 + $0x28] sm:$0xff]  ;;  %s732_s18 = smov 64   ;;  %s733_s19 = smov 4  }
   0xa   :  { %541 = vmatmul.msk.f32.vlgmr.msra.gmra.mxu1 %vm45_vm0, %v21_v8  ;;  %v27_v14 = vld [vmem:[%s1142_s0 + $0x30] sm:$0xff]  ;;  %v28_v15 = vld [vmem:[%s1142_s0 + $0x38] sm:$0xff]  ;;  %v29_v16 = vld [vmem:[%s1142_s0 + $0x40] sm:$0xff] }
   0xb   :  { %v30_v17 = vld [vmem:[%s1142_s0 + $0x48] sm:$0xff]  ;;  %v31_v18 = vld [vmem:[%s1142_s0 + $0x50] sm:$0xff]  ;;  %v32_v19 = vld [vmem:[%s1142_s0 + $0x58] sm:$0xff] }
   0xc   :  { %v33_v20 = vld [vmem:[%s1142_s0 + $0x60] sm:$0xff]  ;;  %v34_v21 = vld [vmem:[%s1142_s0 + $0x68] sm:$0xff]  ;;  %v35_v22 = vld [vmem:[%s1142_s0 + $0x70] sm:$0xff] }
   0xd   :  { %v36_v23 = vld [vmem:[%s1142_s0 + $0x78] sm:$0xff]  ;;  %v903_v54 = vld [vmem:[%s1144_s2] ss:$0 sm:$0xff]  ;;  %s731_s2 = smov [#allocation2]  }
   0xe   :  { %v908_v55 = vld [vmem:[%s1146_s4] ss:$0 sm:$0xff]  ;;  %s511_s4 = sshll.u32 %s731_s2, 4  ;;  %s512_s4 = int_to_ptr.vmem [resolvable:$true] %s511_s4 }
  0x11   :  { %526 = vmatmul.msk.f32.gmra.mxu0 %vm45_vm0, %v22_v9 }
  0x12   :  { %542 = vmatmul.msk.f32.gmra.mxu1 %vm45_vm0, %v22_v9 }
  0x19   :  { %527 = vmatmul.msk.f32.gmra.mxu0 %vm45_vm0, %v23_v10 }
  0x1a   :  { %543 = vmatmul.msk.f32.gmra.mxu1 %vm45_vm0, %v23_v10 }
  0x21   :  { %528 = vmatmul.msk.f32.gmra.mxu0 %vm45_vm0, %v24_v11 }
  0x22   :  { %544 = vmatmul.msk.f32.gmra.mxu1 %vm45_vm0, %v24_v11 }
  0x29   :  { %529 = vmatmul.msk.f32.gmra.mxu0 %vm45_vm0, %v25_v12 }
  0x2a   :  { %545 = vmatmul.msk.f32.gmra.mxu1 %vm45_vm0, %v25_v12 }
  0x31   :  { %530 = vmatmul.msk.f32.gmra.mxu0 %vm45_vm0, %v26_v13 }
  0x32   :  { %546 = vmatmul.msk.f32.gmra.mxu1 %vm45_vm0, %v26_v13 }
  0x39   :  { %531 = vmatmul.msk.f32.gmra.mxu0 %vm45_vm0, %v27_v14 }
  0x3a   :  { %547 = vmatmul.msk.f32.gmra.mxu1 %vm45_vm0, %v27_v14 }
  0x41   :  { %532 = vmatmul.msk.f32.gmra.mxu0 %vm45_vm0, %v28_v15 }
  0x42   :  { %548 = vmatmul.msk.f32.gmra.mxu1 %vm45_vm0, %v28_v15 }
  0x49   :  { %533 = vmatmul.msk.f32.gmra.mxu0 %vm45_vm0, %v29_v16 }
  0x4a   :  { %549 = vmatmul.msk.f32.gmra.mxu1 %vm45_vm0, %v29_v16 }
  0x51   :  { %534 = vmatmul.msk.f32.gmra.mxu0 %vm45_vm0, %v30_v17 }
  0x52   :  { %550 = vmatmul.msk.f32.gmra.mxu1 %vm45_vm0, %v30_v17 }
  0x59   :  { %535 = vmatmul.msk.f32.gmra.mxu0 %vm45_vm0, %v31_v18 }
  0x5a   :  { %551 = vmatmul.msk.f32.gmra.mxu1 %vm45_vm0, %v31_v18 }
  0x61   :  { %536 = vmatmul.msk.f32.gmra.mxu0 %vm45_vm0, %v32_v19 }
  0x62   :  { %552 = vmatmul.msk.f32.gmra.mxu1 %vm45_vm0, %v32_v19 }
  0x69   :  { %537 = vmatmul.msk.f32.gmra.mxu0 %vm45_vm0, %v33_v20 }
  0x6a   :  { %553 = vmatmul.msk.f32.gmra.mxu1 %vm45_vm0, %v33_v20 }
  0x71   :  { %538 = vmatmul.msk.f32.gmra.mxu0 %vm45_vm0, %v34_v21 }
  0x72   :  { %554 = vmatmul.msk.f32.gmra.mxu1 %vm45_vm0, %v34_v21 }
  0x79   :  { %539 = vmatmul.msk.f32.gmra.mxu0 %vm45_vm0, %v35_v22 }
  0x7a   :  { %555 = vmatmul.msk.f32.gmra.mxu1 %vm45_vm0, %v35_v22 }
  0x81   :  { %540 = vmatmul.msk.f32.gmra.mxu0 %vm45_vm0, %v36_v23 }
  0x82   :  { %556 = vmatmul.msk.f32.gmra.mxu1 %vm45_vm0, %v36_v23 }
  0x86   :  { %v868_v24 = vpop.f32.mrf.mxu0 }
  0x87   :  { %v870_v25 = vpop.f32.mrf.mxu1 }
  0x8e   :  { %v872_v26 = vpop.f32.mrf.mxu0 }
  0x8f   :  { %v874_v27 = vpop.f32.mrf.mxu1  ;;  %v115_v22 = vadd.f32 %v903_v54, %v872_v26 }
  0x90   :  { %v188_v23 = vadd.f32 %v908_v55, %v874_v27 }
  0x96   :  { %v876_v28 = vpop.f32.mrf.mxu0 }
  0x97   :  { %v878_v29 = vpop.f32.mrf.mxu1  ;;  %v118_v20 = vadd.f32 %v903_v54, %v876_v28  ;;  %v112_v28 = vadd.f32 %v903_v54, %v868_v24 }
  0x98   :  { %v191_v21 = vadd.f32 %v908_v55, %v878_v29  ;;  %v185_v29 = vadd.f32 %v908_v55, %v870_v25 }
  0x9e   :  { %v880_v30 = vpop.f32.mrf.mxu0 }
  0x9f   :  { %v882_v31 = vpop.f32.mrf.mxu1  ;;  %v121_v18 = vadd.f32 %v903_v54, %v880_v30 }
  0xa0   :  { %v194_v19 = vadd.f32 %v908_v55, %v882_v31 }
  0xa6   :  { %v884_v32 = vpop.f32.mrf.mxu0 }
  0xa7   :  { %v886_v33 = vpop.f32.mrf.mxu1  ;;  %v124_v16 = vadd.f32 %v903_v54, %v884_v32 }
  0xa8   :  { %v197_v17 = vadd.f32 %v908_v55, %v886_v33 }
  0xae   :  { %v888_v34 = vpop.f32.mrf.mxu0 }
  0xaf   :  { %v890_v35 = vpop.f32.mrf.mxu1  ;;  %v127_v14 = vadd.f32 %v903_v54, %v888_v34 }
  0xb0   :  { %v200_v15 = vadd.f32 %v908_v55, %v890_v35 }
  0xb6   :  { %v892_v36 = vpop.f32.mrf.mxu0 }
  0xb7   :  { %v894_v37 = vpop.f32.mrf.mxu1  ;;  %v130_v12 = vadd.f32 %v903_v54, %v892_v36 }
  0xb8   :  { %v203_v13 = vadd.f32 %v908_v55, %v894_v37 }
  0xbe   :  { %v896_v38 = vpop.f32.mrf.mxu0 }
  0xbf   :  { %v898_v39 = vpop.f32.mrf.mxu1  ;;  %v1024_v10 = vadd.f32 %v903_v54, %v896_v38 }
  0xc0   :  { %v206_v11 = vadd.f32 %v908_v55, %v898_v39 }
  0xc6   :  { %v135_v40 = vpop.f32.mrf.mxu0 }
  0xc7   :  { %v208_v41 = vpop.f32.mrf.mxu1  ;;  %v1009_v8 = vadd.f32 %v903_v54, %v135_v40 }
  0xc8   :  { %v1012_v9 = vadd.f32 %v908_v55, %v208_v41 }
  0xce   :  { %v138_v42 = vpop.f32.mrf.mxu0 }
  0xcf   :  { %v211_v43 = vpop.f32.mrf.mxu1  ;;  %v995_v6 = vadd.f32 %v903_v54, %v138_v42 }
  0xd0   :  { %v998_v7 = vadd.f32 %v908_v55, %v211_v43 }
  0xd6   :  { %v141_v44 = vpop.f32.mrf.mxu0 }
  0xd7   :  { %v214_v45 = vpop.f32.mrf.mxu1  ;;  %v981_v4 = vadd.f32 %v903_v54, %v141_v44 }
  0xd8   :  { %v984_v5 = vadd.f32 %v908_v55, %v214_v45 }
  0xde   :  { %v144_v46 = vpop.f32.mrf.mxu0 }
  0xdf   :  { %v217_v47 = vpop.f32.mrf.mxu1  ;;  %v967_v2 = vadd.f32 %v903_v54, %v144_v46 }
  0xe0   :  { %v970_v3 = vadd.f32 %v908_v55, %v217_v47 }
  0xe6   :  { %v147_v48 = vpop.f32.mrf.mxu0 }
  0xe7   :  { %v220_v49 = vpop.f32.mrf.mxu1  ;;  %v953_v0 = vadd.f32 %v903_v54, %v147_v48 }
  0xe8   :  { %v956_v1 = vadd.f32 %v908_v55, %v220_v49 }
  0xee   :  { %v150_v50 = vpop.f32.mrf.mxu0 }
  0xef   :  { %v223_v51 = vpop.f32.mrf.mxu1  ;;  %v939_v62 = vadd.f32 %v903_v54, %v150_v50 }
  0xf0   :  { %v942_v63 = vadd.f32 %v908_v55, %v223_v51 }
  0xf6   :  { %v153_v52 = vpop.f32.mrf.mxu0 }
  0xf7   :  { %v226_v53 = vpop.f32.mrf.mxu1  ;;  %v925_v60 = vadd.f32 %v903_v54, %v153_v52 }
  0xf8   :  { %v928_v61 = vadd.f32 %v908_v55, %v226_v53 }
  0xfe   :  { %v156_v56 = vpop.f32.mrf.mxu0 }
  0xff   :  { %v229_v57 = vpop.f32.mrf.mxu1  ;;  %v911_v58 = vadd.f32 %v903_v54, %v156_v56 }
 0x100   :  { %v914_v59 = vadd.f32 %v908_v55, %v229_v57 }
 0x101   :  { %557 = vmatpush.xpose.msk.msrb.mxu0 %vm232_vm1, %v911_v58  ;;  %668 = vmatpush.xpose.msk.msra.mxu2 %vm232_vm1, %v911_v58 }
 0x102   :  { %589 = vmatpush.xpose.msk.msrb.mxu1 %vm232_vm1, %v914_v59  ;;  %684 = vmatpush.xpose.msk.msra.mxu3 %vm232_vm1, %v914_v59 }
 0x105   :  { %558 = vmatpush.xpose.msk.msrb.mxu0 %vm232_vm1, %v925_v60  ;;  %669 = vmatpush.xpose.msk.msra.mxu2 %vm232_vm1, %v925_v60 }
 0x106   :  { %590 = vmatpush.xpose.msk.msrb.mxu1 %vm232_vm1, %v928_v61  ;;  %685 = vmatpush.xpose.msk.msra.mxu3 %vm232_vm1, %v928_v61 }
 0x109   :  { %559 = vmatpush.xpose.msk.msrb.mxu0 %vm232_vm1, %v939_v62  ;;  %670 = vmatpush.xpose.msk.msra.mxu2 %vm232_vm1, %v939_v62 }
 0x10a   :  { %591 = vmatpush.xpose.msk.msrb.mxu1 %vm232_vm1, %v942_v63  ;;  %686 = vmatpush.xpose.msk.msra.mxu3 %vm232_vm1, %v942_v63 }
 0x10d   :  { %560 = vmatpush.xpose.msk.msrb.mxu0 %vm232_vm1, %v953_v0  ;;  %671 = vmatpush.xpose.msk.msra.mxu2 %vm232_vm1, %v953_v0 }
 0x10e   :  { %592 = vmatpush.xpose.msk.msrb.mxu1 %vm232_vm1, %v956_v1  ;;  %687 = vmatpush.xpose.msk.msra.mxu3 %vm232_vm1, %v956_v1 }
 0x111   :  { %561 = vmatpush.xpose.msk.msrb.mxu0 %vm232_vm1, %v967_v2  ;;  %672 = vmatpush.xpose.msk.msra.mxu2 %vm232_vm1, %v967_v2 }
 0x112   :  { %593 = vmatpush.xpose.msk.msrb.mxu1 %vm232_vm1, %v970_v3  ;;  %688 = vmatpush.xpose.msk.msra.mxu3 %vm232_vm1, %v970_v3 }
 0x115   :  { %562 = vmatpush.xpose.msk.msrb.mxu0 %vm232_vm1, %v981_v4  ;;  %673 = vmatpush.xpose.msk.msra.mxu2 %vm232_vm1, %v981_v4 }
 0x116   :  { %594 = vmatpush.xpose.msk.msrb.mxu1 %vm232_vm1, %v984_v5  ;;  %689 = vmatpush.xpose.msk.msra.mxu3 %vm232_vm1, %v984_v5 }
 0x119   :  { %563 = vmatpush.xpose.msk.msrb.mxu0 %vm232_vm1, %v995_v6  ;;  %674 = vmatpush.xpose.msk.msra.mxu2 %vm232_vm1, %v995_v6 }
 0x11a   :  { %595 = vmatpush.xpose.msk.msrb.mxu1 %vm232_vm1, %v998_v7  ;;  %690 = vmatpush.xpose.msk.msra.mxu3 %vm232_vm1, %v998_v7 }
 0x11d   :  { %564 = vmatpush.xpose.msk.msrb.mxu0 %vm232_vm1, %v1009_v8  ;;  %675 = vmatpush.xpose.msk.msra.mxu2 %vm232_vm1, %v1009_v8 }
 0x11e   :  { %596 = vmatpush.xpose.msk.msrb.mxu1 %vm232_vm1, %v1012_v9  ;;  %691 = vmatpush.xpose.msk.msra.mxu3 %vm232_vm1, %v1012_v9 }
 0x121   :  { %565 = vmatpush.xpose.msk.msrb.mxu0 %vm232_vm1, %v1024_v10  ;;  %676 = vmatpush.xpose.msk.msra.mxu2 %vm232_vm1, %v1024_v10 }
 0x122   :  { %597 = vmatpush.xpose.msk.msrb.mxu1 %vm232_vm1, %v206_v11  ;;  %692 = vmatpush.xpose.msk.msra.mxu3 %vm232_vm1, %v206_v11 }
 0x125   :  { %566 = vmatpush.xpose.msk.msrb.mxu0 %vm232_vm1, %v130_v12  ;;  %677 = vmatpush.xpose.msk.msra.mxu2 %vm232_vm1, %v130_v12 }
 0x126   :  { %598 = vmatpush.xpose.msk.msrb.mxu1 %vm232_vm1, %v203_v13  ;;  %693 = vmatpush.xpose.msk.msra.mxu3 %vm232_vm1, %v203_v13 }
 0x129   :  { %567 = vmatpush.xpose.msk.msrb.mxu0 %vm232_vm1, %v127_v14  ;;  %678 = vmatpush.xpose.msk.msra.mxu2 %vm232_vm1, %v127_v14 }
 0x12a   :  { %599 = vmatpush.xpose.msk.msrb.mxu1 %vm232_vm1, %v200_v15  ;;  %694 = vmatpush.xpose.msk.msra.mxu3 %vm232_vm1, %v200_v15 }
 0x12d   :  { %568 = vmatpush.xpose.msk.msrb.mxu0 %vm232_vm1, %v124_v16  ;;  %679 = vmatpush.xpose.msk.msra.mxu2 %vm232_vm1, %v124_v16 }
 0x12e   :  { %600 = vmatpush.xpose.msk.msrb.mxu1 %vm232_vm1, %v197_v17  ;;  %695 = vmatpush.xpose.msk.msra.mxu3 %vm232_vm1, %v197_v17 }
 0x131   :  { %569 = vmatpush.xpose.msk.msrb.mxu0 %vm232_vm1, %v121_v18  ;;  %680 = vmatpush.xpose.msk.msra.mxu2 %vm232_vm1, %v121_v18 }
 0x132   :  { %601 = vmatpush.xpose.msk.msrb.mxu1 %vm232_vm1, %v194_v19  ;;  %696 = vmatpush.xpose.msk.msra.mxu3 %vm232_vm1, %v194_v19 }
 0x135   :  { %570 = vmatpush.xpose.msk.msrb.mxu0 %vm232_vm1, %v118_v20  ;;  %681 = vmatpush.xpose.msk.msra.mxu2 %vm232_vm1, %v118_v20 }
 0x136   :  { %602 = vmatpush.xpose.msk.msrb.mxu1 %vm232_vm1, %v191_v21  ;;  %697 = vmatpush.xpose.msk.msra.mxu3 %vm232_vm1, %v191_v21 }
 0x139   :  { %571 = vmatpush.xpose.msk.msrb.mxu0 %vm232_vm1, %v115_v22  ;;  %682 = vmatpush.xpose.msk.msra.mxu2 %vm232_vm1, %v115_v22 }
 0x13a   :  { %603 = vmatpush.xpose.msk.msrb.mxu1 %vm232_vm1, %v188_v23  ;;  %698 = vmatpush.xpose.msk.msra.mxu3 %vm232_vm1, %v188_v23 }
 0x13d   :  { %572 = vmatpush.xpose.msk.msrb.mxu0 %vm232_vm1, %v112_v28  ;;  %683 = vmatpush.xpose.msk.msra.mxu2 %vm232_vm1, %v112_v28 }
 0x13e   :  { %604 = vmatpush.xpose.msk.msrb.mxu1 %vm232_vm1, %v185_v29  ;;  %699 = vmatpush.xpose.msk.msra.mxu3 %vm232_vm1, %v185_v29 }
 0x140   :  { %573 = vmatmul.msk.f32.vlgmr.msrb.gmra.mxu0 %vm232_vm1, %v185_v29  ;;  %576 = vmatmul.msk.f32.vlgmr.msra.gmra.mxu2 %vm232_vm1, %v194_v19 }
 0x141   :  { %605 = vmatmul.msk.f32.vlgmr.msrb.gmra.mxu1 %vm232_vm1, %v112_v28  ;;  %608 = vmatmul.msk.f32.vlgmr.msra.gmra.mxu3 %vm232_vm1, %v121_v18 }
 0x148   :  { %574 = vmatmul.msk.f32.gmra.mxu0 %vm232_vm1, %v188_v23  ;;  %577 = vmatmul.msk.f32.gmra.mxu2 %vm232_vm1, %v197_v17 }
 0x149   :  { %606 = vmatmul.msk.f32.gmra.mxu1 %vm232_vm1, %v115_v22  ;;  %609 = vmatmul.msk.f32.gmra.mxu3 %vm232_vm1, %v124_v16 }
 0x150   :  { %575 = vmatmul.msk.f32.gmra.mxu0 %vm232_vm1, %v191_v21  ;;  %578 = vmatmul.msk.f32.gmra.mxu2 %vm232_vm1, %v200_v15 }
 0x151   :  { %607 = vmatmul.msk.f32.gmra.mxu1 %vm232_vm1, %v118_v20  ;;  %610 = vmatmul.msk.f32.gmra.mxu3 %vm232_vm1, %v127_v14 }
 0x158   :  { %579 = vmatmul.msk.f32.gmra.mxu2 %vm232_vm1, %v203_v13 }
 0x159   :  { %611 = vmatmul.msk.f32.gmra.mxu3 %vm232_vm1, %v130_v12 }
 0x160   :  { %580 = vmatmul.msk.f32.gmra.mxu2 %vm232_vm1, %v206_v11 }
 0x161   :  { %612 = vmatmul.msk.f32.gmra.mxu3 %vm232_vm1, %v1024_v10 }
 0x168   :  { %581 = vmatmul.msk.f32.gmra.mxu2 %vm232_vm1, %v1012_v9 }
 0x169   :  { %613 = vmatmul.msk.f32.gmra.mxu3 %vm232_vm1, %v1009_v8 }
 0x170   :  { %582 = vmatmul.msk.f32.gmra.mxu2 %vm232_vm1, %v998_v7 }
 0x171   :  { %614 = vmatmul.msk.f32.gmra.mxu3 %vm232_vm1, %v995_v6 }
 0x178   :  { %583 = vmatmul.msk.f32.gmra.mxu2 %vm232_vm1, %v984_v5 }
 0x179   :  { %615 = vmatmul.msk.f32.gmra.mxu3 %vm232_vm1, %v981_v4 }
 0x180   :  { %584 = vmatmul.msk.f32.gmra.mxu2 %vm232_vm1, %v970_v3 }
 0x181   :  { %616 = vmatmul.msk.f32.gmra.mxu3 %vm232_vm1, %v967_v2 }
 0x188   :  { %585 = vmatmul.msk.f32.gmra.mxu2 %vm232_vm1, %v956_v1 }
 0x189   :  { %617 = vmatmul.msk.f32.gmra.mxu3 %vm232_vm1, %v953_v0 }
 0x190   :  { %586 = vmatmul.msk.f32.gmra.mxu2 %vm232_vm1, %v942_v63 }
 0x191   :  { %618 = vmatmul.msk.f32.gmra.mxu3 %vm232_vm1, %v939_v62 }
 0x198   :  { %587 = vmatmul.msk.f32.gmra.mxu2 %vm232_vm1, %v928_v61 }
 0x199   :  { %619 = vmatmul.msk.f32.gmra.mxu3 %vm232_vm1, %v925_v60 }
 0x1a0   :  { %588 = vmatmul.msk.f32.gmra.mxu2 %vm232_vm1, %v914_v59 }
 0x1a1   :  { %620 = vmatmul.msk.f32.gmra.mxu3 %vm232_vm1, %v911_v58 }
 0x1bd   :  { %v346_v24 = vpop.f32.mrf.mxu0 }
 0x1be   :  { %v411_v25 = vpop.f32.mrf.mxu1 }
 0x1bf   :  { %v412_v30 = vadd.f32 %v411_v25, %v346_v24 }
 0x1c1   :  { %v459_v34 = vmul.f32 0.25, %v412_v30 }
 0x1c3   :  { %v355_v26 = vpop.f32.mrf.mxu2 }
 0x1c4   :  { %v420_v27 = vpop.f32.mrf.mxu3 }
 0x1c5   :  { %v349_v31 = vpop.f32.mrf.mxu0  ;;  %v421_v39 = vadd.f32 %v420_v27, %v355_v26 }
 0x1c6   :  { %v414_v32 = vpop.f32.mrf.mxu1 }
 0x1c7   :  { %v415_v33 = vadd.f32 %v414_v32, %v349_v31  ;;  %v462_v43 = vmul.f32 0.25, %v421_v39 }
 0x1c9   :  { %v460_v35 = vmul.f32 0.25, %v415_v33 }
 0x1cb   :  { %v624_v36 = vpack.c.bf16 %v460_v35, %v459_v34  ;;  %v358_v37 = vpop.f32.mrf.mxu2 }
 0x1cc   :  { %v423_v38 = vpop.f32.mrf.mxu3 }
 0x1cd   :  { %625 = vst [vmem:[#allocation2] sm:$0xff] %v624_v36   ;;  %v352_v40 = vpop.f32.mrf.mxu0  ;;  %v424_v45 = vadd.f32 %v423_v38, %v358_v37 }
 0x1ce   :  { %v417_v41 = vpop.f32.mrf.mxu1 }
 0x1cf   :  { %v418_v42 = vadd.f32 %v417_v41, %v352_v40  ;;  %v463_v50 = vmul.f32 0.25, %v424_v45 }
 0x1d1   :  { %v461_v44 = vmul.f32 0.25, %v418_v42 }
 0x1d3   :  { %v629_v46 = vpack.c.bf16 %v462_v43, %v461_v44  ;;  %v361_v47 = vpop.f32.mrf.mxu2 }
 0x1d4   :  { %v426_v48 = vpop.f32.mrf.mxu3 }
 0x1d5   :  { %661 = vst [vmem:[#allocation2 + $0x8] sm:$0xff] %v629_v46   ;;  %v427_v49 = vadd.f32 %v426_v48, %v361_v47 }
 0x1d7   :  { %v464_v51 = vmul.f32 0.25, %v427_v49 }
 0x1d9   :  { %v634_v52 = vpack.c.bf16 %v464_v51, %v463_v50 }
 0x1db   :  { %662 = vst [vmem:[#allocation2 + $0x10] sm:$0xff] %v634_v52   ;;  %v364_v53 = vpop.f32.mrf.mxu2 }
 0x1dc   :  { %v429_v54 = vpop.f32.mrf.mxu3 }
 0x1dd   :  { %v430_v55 = vadd.f32 %v429_v54, %v364_v53 }
 0x1df   :  { %v465_v59 = vmul.f32 0.25, %v430_v55 }
 0x1e3   :  { %v367_v56 = vpop.f32.mrf.mxu2 }
 0x1e4   :  { %v432_v57 = vpop.f32.mrf.mxu3 }
 0x1e5   :  { %v433_v58 = vadd.f32 %v432_v57, %v367_v56 }
 0x1e7   :  { %v466_v60 = vmul.f32 0.25, %v433_v58 }
 0x1e9   :  { %v639_v61 = vpack.c.bf16 %v466_v60, %v465_v59 }
 0x1eb   :  { %663 = vst [vmem:[#allocation2 + $0x18] sm:$0xff] %v639_v61   ;;  %v370_v62 = vpop.f32.mrf.mxu2 }
 0x1ec   :  { %v435_v63 = vpop.f32.mrf.mxu3 }
 0x1ed   :  { %v436_v0 = vadd.f32 %v435_v63, %v370_v62 }
 0x1ef   :  { %v467_v4 = vmul.f32 0.25, %v436_v0 }
 0x1f3   :  { %v373_v1 = vpop.f32.mrf.mxu2 }
 0x1f4   :  { %v438_v2 = vpop.f32.mrf.mxu3 }
 0x1f5   :  { %v439_v3 = vadd.f32 %v438_v2, %v373_v1 }
 0x1f7   :  { %v468_v5 = vmul.f32 0.25, %v439_v3 }
 0x1f9   :  { %v644_v6 = vpack.c.bf16 %v468_v5, %v467_v4 }
 0x1fb   :  { %664 = vst [vmem:[#allocation2 + $0x20] sm:$0xff] %v644_v6   ;;  %v376_v7 = vpop.f32.mrf.mxu2 }
 0x1fc   :  { %v441_v8 = vpop.f32.mrf.mxu3 }
 0x1fd   :  { %v442_v9 = vadd.f32 %v441_v8, %v376_v7 }
 0x1ff   :  { %v469_v13 = vmul.f32 0.25, %v442_v9 }
 0x203   :  { %v379_v10 = vpop.f32.mrf.mxu2 }
 0x204   :  { %v444_v11 = vpop.f32.mrf.mxu3 }
 0x205   :  { %v445_v12 = vadd.f32 %v444_v11, %v379_v10 }
 0x207   :  { %v470_v14 = vmul.f32 0.25, %v445_v12 }
 0x209   :  { %v649_v15 = vpack.c.bf16 %v470_v14, %v469_v13 }
 0x20b   :  { %665 = vst [vmem:[#allocation2 + $0x28] sm:$0xff] %v649_v15   ;;  %v382_v16 = vpop.f32.mrf.mxu2 }
 0x20c   :  { %v447_v17 = vpop.f32.mrf.mxu3 }
 0x20d   :  { %v448_v18 = vadd.f32 %v447_v17, %v382_v16 }
 0x20f   :  { %v471_v22 = vmul.f32 0.25, %v448_v18 }
 0x213   :  { %v385_v19 = vpop.f32.mrf.mxu2 }
 0x214   :  { %v450_v20 = vpop.f32.mrf.mxu3 }
 0x215   :  { %v451_v21 = vadd.f32 %v450_v20, %v385_v19 }
 0x217   :  { %v472_v23 = vmul.f32 0.25, %v451_v21 }
 0x219   :  { %v654_v28 = vpack.c.bf16 %v472_v23, %v471_v22 }
 0x21b   :  { %666 = vst [vmem:[#allocation2 + $0x30] sm:$0xff] %v654_v28   ;;  %v388_v29 = vpop.f32.mrf.mxu2 }
 0x21c   :  { %v453_v24 = vpop.f32.mrf.mxu3 }
 0x21d   :  { %v454_v25 = vadd.f32 %v453_v24, %v388_v29 }
 0x21f   :  { %v473_v31 = vmul.f32 0.25, %v454_v25 }
 0x223   :  { %v391_v26 = vpop.f32.mrf.mxu2 }
 0x224   :  { %v456_v27 = vpop.f32.mrf.mxu3 }
 0x225   :  { %v457_v30 = vadd.f32 %v456_v27, %v391_v26 }
 0x227   :  { %v474_v32 = vmul.f32 0.25, %v457_v30 }
 0x229   :  { %v659_v33 = vpack.c.bf16 %v474_v32, %v473_v31 }
 0x22b   :  { %667 = vst [vmem:[#allocation2 + $0x38] sm:$0xff] %v659_v33  }
 0x22c   :  { %519 = dma.vmem_to_hbm [thread:$0]  %s512_s4, 1024, %s514_s17, [#allocation3], %s732_s18, %s732_s18, %s733_s19  }
 0x22d   :  { %729 = dma.done.wait [#allocation3], 1024  }
 0x22e   :  { %730 = vsyncadd [#allocation3], 4294966272 }
 0x22f   :  { %524 = vsyncpa [#allocation3], 1 }

</bundles_post_ra>
